<compile_context>
chip_gen: v6e
topology: v6e:2x2x1
jax: 0.10.0
libtpu: 0.0.40
codegen_flags: <defaults>
</compile_context>

<pallas_src>
import math

import jax
import jax.numpy as jnp
from jax.experimental import pallas as pl
from jax.experimental.pallas import tpu as pltpu


def _dsvdd_kernel(x_ref, w_ref, c_ref, out_ref):
    # x_ref: [tB, D_in] bf16   w_ref: [D_in, D_hid] bf16
    # c_ref: [1, D_hid] f32    out_ref: [tB, 1] f32
    h = jnp.dot(x_ref[...], w_ref[...],
                preferred_element_type=jnp.float32)          # MXU, f32 accum
    diff = h - c_ref[...]                                     # VPU, f32
    out_ref[...] = jnp.sum(diff * diff, axis=-1, keepdims=True)  # reduce, f32


def _round_up(x, m):
    return ((x + m - 1) // m) * m


def _pick_batch_tile(b, d_in, *, bytes_per_elem=2, x_budget_bytes=8 << 20):
    """Pick a batch tile: multiple of 16, double-buffered x tile within budget."""
    tb = x_budget_bytes // (2 * d_in * bytes_per_elem)
    tb = max(16, min(1024, (tb // 16) * 16))
    # No point tiling finer than the (sublane-padded) batch itself.
    tb = min(tb, _round_up(b, 16))
    return tb


def dsvdd_score(x_nchw, w, c, *, vmem_limit_bytes=48 << 20):
    """x_nchw: [B, C, H, W]; w: [C*H*W, D_hid]; c: [D_hid] -> [B] f32 scores."""
    b = x_nchw.shape[0]
    d_in = math.prod(x_nchw.shape[1:])
    d_hid = w.shape[1]

    # Stream activations / weights as bf16 (HBM-bound kernel); center stays f32.
    # In production the weights would already live in bf16 (no per-call cast).
    x_flat = x_nchw.reshape(b, d_in).astype(jnp.bfloat16)
    w_bf16 = w.astype(jnp.bfloat16)
    c2d = c.reshape(1, d_hid).astype(jnp.float32)

    tb = _pick_batch_tile(b, d_in)
    b_pad = _round_up(b, tb)
    if b_pad != b:
        x_flat = jnp.pad(x_flat, ((0, b_pad - b), (0, 0)))
    num_tiles = b_pad // tb

    out = pl.pallas_call(
        _dsvdd_kernel,
        out_shape=jax.ShapeDtypeStruct((b_pad, 1), jnp.float32),
        grid_spec=pltpu.PrefetchScalarGridSpec(
            num_scalar_prefetch=0,
            grid=(num_tiles,),
            in_specs=[
                # x: one batch tile per grid step (pipelined DMA).
                pl.BlockSpec((tb, d_in), lambda i: (i, 0)),
                # W and c: constant block index -> stay resident in VMEM.
                pl.BlockSpec((d_in, d_hid), lambda i: (0, 0)),
                pl.BlockSpec((1, d_hid), lambda i: (0, 0)),
            ],
            out_specs=pl.BlockSpec((tb, 1), lambda i: (i, 0)),
        ),
        compiler_params=pltpu.CompilerParams(
            dimension_semantics=("parallel",),   # v7x: shard batch tiles over 2 TCs
            vmem_limit_bytes=vmem_limit_bytes),
    )(x_flat, w_bf16, c2d)

    return out[:b, 0]


def _reference(x_nchw, w, c):
    """bf16-consistent pure-JAX reference (same rounding of x, W as the kernel)."""
    b = x_nchw.shape[0]
    d_in = math.prod(x_nchw.shape[1:])
    xf = x_nchw.reshape(b, d_in).astype(jnp.bfloat16).astype(jnp.float32)
    wf = w.astype(jnp.bfloat16).astype(jnp.float32)
    h = xf @ wf
    return jnp.sum((h - c.astype(jnp.float32)[None, :]) ** 2, axis=-1)


if __name__ == "__main__":
    # Small shapes consistent with an NCHW image input.
    B, C, H, W = 2, 4, 16, 16
    D_IN = C * H * W          # 1024
    D_HID = 32

    key = jax.random.PRNGKey(0)
    kx, kw, kc = jax.random.split(key, 3)

    x = jax.random.normal(kx, (B, C, H, W), dtype=jnp.float32)
    # Deterministic synthetic parameters (no checkpoint load).
    w = jax.random.normal(kw, (D_IN, D_HID), dtype=jnp.float32) * 0.02
    center = jax.random.normal(kc, (D_HID,), dtype=jnp.float32)

    scores = dsvdd_score(x, w, center)
    jax.block_until_ready(scores)

    ref = _reference(x, w, center)
    assert scores.shape == (B,), scores.shape
    assert jnp.allclose(scores, ref, rtol=1e-2, atol=1e-2), (scores, ref)

    # Exercise the multi-tile + batch-padding path (tb=16 -> 40 pads to 48).
    B2 = 40
    x2 = jax.random.normal(jax.random.PRNGKey(1), (B2, C, H, W), dtype=jnp.float32)
    scores2 = dsvdd_score(x2, w, center)
    jax.block_until_ready(scores2)
    ref2 = _reference(x2, w, center)
    assert scores2.shape == (B2,), scores2.shape
    assert jnp.allclose(scores2, ref2, rtol=1e-2, atol=1e-2), (scores2, ref2)

    print("KERNEL_OK")
</pallas_src>

<mosaic_0001>
module attributes {stable_mosaic.version = 11 : i64} {
  func.func @_dsvdd_kernel(%arg0: i32, %arg1: memref<16x1024xbf16, #tpu.memory_space<vmem>>, %arg2: memref<1024x32xbf16, #tpu.memory_space<vmem>>, %arg3: memref<1x32xf32, #tpu.memory_space<vmem>>, %arg4: memref<16x1xf32, #tpu.memory_space<vmem>>) attributes {dimension_semantics = [#tpu.dimension_semantics<parallel>], iteration_bounds = array<i64: 1>, scalar_prefetch = 0 : i64, scratch_operands = 0 : i64, tpu.core_type = #tpu.core_type<tc>, window_params = [{transform_indices = @transform_0, window_bounds = array<i64: 16, 1024>}, {pipeline_mode = #tpu.pipeline_mode<synchronous>, transform_indices = @transform_1, window_bounds = array<i64: 1024, 32>}, {pipeline_mode = #tpu.pipeline_mode<synchronous>, transform_indices = @transform_2, window_bounds = array<i64: 1, 32>}, {transform_indices = @transform_3, window_bounds = array<i64: 16, 1>}]} {
    %c0 = arith.constant 0 : index
    %c0_0 = arith.constant 0 : index
    %0 = vector.load %arg1[%c0, %c0_0] : memref<16x1024xbf16, #tpu.memory_space<vmem>>, vector<16x1024xbf16>
    %c0_1 = arith.constant 0 : index
    %c0_2 = arith.constant 0 : index
    %1 = vector.load %arg2[%c0_1, %c0_2] : memref<1024x32xbf16, #tpu.memory_space<vmem>>, vector<1024x32xbf16>
    %cst = arith.constant dense<0.000000e+00> : vector<16x32xf32>
    %2 = tpu.matmul %0, %1, %cst {dimension_numbers = #tpu.dot_dimension_numbers<[1], [0], [0], [1], [0, 0, 1, 1], [], []>} : vector<16x1024xbf16>, vector<1024x32xbf16>, vector<16x32xf32> -> vector<16x32xf32>
    %c0_3 = arith.constant 0 : index
    %c0_4 = arith.constant 0 : index
    %3 = vector.load %arg3[%c0_3, %c0_4] : memref<1x32xf32, #tpu.memory_space<vmem>>, vector<1x32xf32>
    %4 = vector.broadcast %3 : vector<1x32xf32> to vector<16x32xf32>
    %5 = arith.subf %2, %4 : vector<16x32xf32>
    %6 = arith.mulf %5, %5 : vector<16x32xf32>
    %cst_5 = arith.constant dense<0.000000e+00> : vector<16xf32>
    %7 = vector.multi_reduction <add>, %6, %cst_5 [1] : vector<16x32xf32> to vector<16xf32>
    %8 = vector.shape_cast %7 : vector<16xf32> to vector<16x1xf32>
    %c0_6 = arith.constant 0 : index
    %c0_7 = arith.constant 0 : index
    %9 = vector.load %arg4[%c0_6, %c0_7] : memref<16x1xf32, #tpu.memory_space<vmem>>, vector<16x1xf32>
    tpu.vector_store %arg4[%c0_6, %c0_7], %8 {strides = array<i32>} : memref<16x1xf32, #tpu.memory_space<vmem>>, vector<16x1xf32>,
    return
  }
  func.func @transform_0(%arg0: i32) -> (i32, i32) {
    %c0_i32 = arith.constant 0 : i32
    %c0_i32_0 = arith.constant 0 : i32
    return %arg0, %c0_i32 : i32, i32
  }
  func.func @transform_1(%arg0: i32) -> (i32, i32) {
    %c0_i32 = arith.constant 0 : i32
    %c0_i32_0 = arith.constant 0 : i32
    %c0_i32_1 = arith.constant 0 : i32
    return %c0_i32, %c0_i32_0 : i32, i32
  }
  func.func @transform_2(%arg0: i32) -> (i32, i32) {
    %c0_i32 = arith.constant 0 : i32
    %c0_i32_0 = arith.constant 0 : i32
    %c0_i32_1 = arith.constant 0 : i32
    return %c0_i32, %c0_i32_0 : i32, i32
  }
  func.func @transform_3(%arg0: i32) -> (i32, i32) {
    %c0_i32 = arith.constant 0 : i32
    %c0_i32_0 = arith.constant 0 : i32
    return %arg0, %c0_i32 : i32, i32
  }
}

</mosaic_0001>

<bundles_post_ra>
// kernel: tpu_custom_call.1
= control target key start
LH: loop header
LB: loop body
LE: loop exit
PB: predicated region body
PF: predicated region fallthrough
CT: control target
= control target key end

     0   :  { %vm750_vm0 = vcmask 261120   ;;  %vm757_vm1 = vcmask 7168   ;;  %s1234_s1 = inlined_call_operand.vmem [shape: bf16[1024,32], index: 1, kind: input, shape index: {}]   ;;  %s1235_s0 = inlined_call_operand.vmem [shape: bf16[16,1024], index: 0, kind: input, shape index: {}]   ;;  %s1236_s2 = inlined_call_operand.vmem [shape: f32[1,32], index: 2, kind: input, shape index: {}]   ;;  %s1237_s3 = inlined_call_operand.vmem [shape: f32[16,1], index: 3, kind: output, shape index: {}]  }
   0x1   :  { %v925_v0 = vld [vmem:[%s1234_s1 + $0x78] sm:$0xff]   ;;  %v929_v4 = vld [vmem:[%s1234_s1 + $0x70] sm:$0xff]   ;;  %v933_v8 = vld [vmem:[%s1234_s1 + $0x68] sm:$0xff]  }
   0x2   :  { %v926_v1 = vld [vmem:[%s1234_s1 + $0xf8] sm:$0xff]   ;;  %837 = vmatprep.subr.bf16.mxu0 %v925_v0  ;;  %v930_v5 = vld [vmem:[%s1234_s1 + $0xf0] sm:$0xff]   ;;  %v934_v9 = vld [vmem:[%s1234_s1 + $0xe8] sm:$0xff]  }
   0x3   :  { %v927_v2 = vld [vmem:[%s1234_s1 + $0x38] sm:$0xff]   ;;  %859 = vmatprep.subr.bf16.mxu1 %v926_v1  ;;  %v931_v6 = vld [vmem:[%s1234_s1 + $0x30] sm:$0xff]   ;;  %v935_v10 = vld [vmem:[%s1234_s1 + $0x28] sm:$0xff]  }
   0x4   :  { %v928_v3 = vld [vmem:[%s1234_s1 + $0xb8] sm:$0xff]   ;;  %838 = vmatpush3.bf16.msra.mxu0 %v927_v2  ;;  %v932_v7 = vld [vmem:[%s1234_s1 + $0xb0] sm:$0xff]   ;;  %v936_v11 = vld [vmem:[%s1234_s1 + $0xa8] sm:$0xff]  }
   0x5   :  { %860 = vmatpush3.bf16.msra.mxu1 %v928_v3  ;;  %839 = vmatprep.subr.bf16.mxu0 %v929_v4  ;;  %v937_v12 = vld [vmem:[%s1234_s1 + $0x60] sm:$0xff]   ;;  %v941_v16 = vld [vmem:[%s1234_s1 + $0x58] sm:$0xff]   ;;  %v945_v20 = vld [vmem:[%s1234_s1 + $0x50] sm:$0xff]  }
   0x6   :  { %861 = vmatprep.subr.bf16.mxu1 %v930_v5  ;;  %v938_v13 = vld [vmem:[%s1234_s1 + $0xe0] sm:$0xff]   ;;  %v942_v17 = vld [vmem:[%s1234_s1 + $0xd8] sm:$0xff]   ;;  %v946_v21 = vld [vmem:[%s1234_s1 + $0xd0] sm:$0xff]  }
   0x7   :  { %v939_v14 = vld [vmem:[%s1234_s1 + $0x20] sm:$0xff]   ;;  %v943_v18 = vld [vmem:[%s1234_s1 + $0x18] sm:$0xff]   ;;  %v947_v22 = vld [vmem:[%s1234_s1 + $0x10] sm:$0xff]  }
   0x8   :  { %840 = vmatpush3.bf16.msra.mxu0 %v931_v6  ;;  %v940_v15 = vld [vmem:[%s1234_s1 + $0xa0] sm:$0xff]   ;;  %v944_v19 = vld [vmem:[%s1234_s1 + $0x98] sm:$0xff]   ;;  %v948_v23 = vld [vmem:[%s1234_s1 + $0x90] sm:$0xff]  }
   0x9   :  { %862 = vmatpush3.bf16.msra.mxu1 %v932_v7  ;;  %841 = vmatprep.subr.bf16.mxu0 %v933_v8  ;;  %v949_v24 = vld [vmem:[%s1234_s1 + $0x48] sm:$0xff]   ;;  %v953_v28 = vld [vmem:[%s1234_s1 + $0x40] sm:$0xff]   ;;  %v957_v40 = vld [vmem:[%s1234_s1 + $0x178] sm:$0xff]  }
   0xa   :  { %863 = vmatprep.subr.bf16.mxu1 %v934_v9  ;;  %v950_v25 = vld [vmem:[%s1234_s1 + $0xc8] sm:$0xff]   ;;  %v954_v29 = vld [vmem:[%s1234_s1 + $0xc0] sm:$0xff]   ;;  %v958_v41 = vld [vmem:[%s1234_s1 + $0x1f8] sm:$0xff]  }
   0xb   :  { %v951_v26 = vld [vmem:[%s1234_s1 + $0x8] sm:$0xff]   ;;  %v955_v30 = vld [vmem:[%s1234_s1] sm:$0xff]   ;;  %v959_v42 = vld [vmem:[%s1234_s1 + $0x138] sm:$0xff]  }
   0xc   :  { %842 = vmatpush3.bf16.msra.mxu0 %v935_v10  ;;  %v952_v27 = vld [vmem:[%s1234_s1 + $0x88] sm:$0xff]   ;;  %v956_v31 = vld [vmem:[%s1234_s1 + $0x80] sm:$0xff]   ;;  %v960_v43 = vld [vmem:[%s1234_s1 + $0x1b8] sm:$0xff]  }
   0xd   :  { %864 = vmatpush3.bf16.msra.mxu1 %v936_v11  ;;  %843 = vmatprep.subr.bf16.mxu0 %v937_v12  ;;  %v15_v32 = vld [vmem:[%s1235_s0] sm:$0xff]  ;;  %v16_v34 = vld [vmem:[%s1235_s0 + $0x8] sm:$0xff]  ;;  %v961_v44 = vld [vmem:[%s1234_s1 + $0x170] sm:$0xff]  }
   0xe   :  { %865 = vmatprep.subr.bf16.mxu1 %v938_v13  ;;  %v19_v33 = vld [vmem:[%s1235_s0 + $0x20] sm:$0xff]  ;;  %v20_v37 = vld [vmem:[%s1235_s0 + $0x28] sm:$0xff]  ;;  %v962_v45 = vld [vmem:[%s1234_s1 + $0x1f0] sm:$0xff]  }
   0xf   :  { %v764_v35 = vcombine.low %v15_v32, %v19_v33  ;;  %v765_v36 = vcombine.high %v15_v32, %v19_v33  ;;  %v766_v38 = vcombine.low %v16_v34, %v20_v37  ;;  %v767_v39 = vcombine.high %v16_v34, %v20_v37  ;;  %v963_v46 = vld [vmem:[%s1234_s1 + $0x130] sm:$0xff]   ;;  %v965_v48 = vld [vmem:[%s1234_s1 + $0x168] sm:$0xff]   ;;  %v969_v52 = vld [vmem:[%s1234_s1 + $0x160] sm:$0xff]  }
  0x10   :  { %844 = vmatpush3.bf16.msra.mxu0 %v939_v14  ;;  %v964_v47 = vld [vmem:[%s1234_s1 + $0x1b0] sm:$0xff]   ;;  %v966_v49 = vld [vmem:[%s1234_s1 + $0x1e8] sm:$0xff]   ;;  %v970_v53 = vld [vmem:[%s1234_s1 + $0x1e0] sm:$0xff]  }
  0x11   :  { %866 = vmatpush3.bf16.msra.mxu1 %v940_v15  ;;  %845 = vmatprep.subr.bf16.mxu0 %v941_v16  ;;  %v967_v50 = vld [vmem:[%s1234_s1 + $0x128] sm:$0xff]   ;;  %v971_v54 = vld [vmem:[%s1234_s1 + $0x120] sm:$0xff]   ;;  %v973_v56 = vld [vmem:[%s1234_s1 + $0x158] sm:$0xff]  }
  0x12   :  { %867 = vmatprep.subr.bf16.mxu1 %v942_v17  ;;  %607 = vmatprep.mubr.bf16.mxu0 %v765_v36  ;;  %v968_v51 = vld [vmem:[%s1234_s1 + $0x1a8] sm:$0xff]   ;;  %v972_v55 = vld [vmem:[%s1234_s1 + $0x1a0] sm:$0xff]   ;;  %v974_v57 = vld [vmem:[%s1234_s1 + $0x1d8] sm:$0xff]  }
  0x13   :  { %648 = vmatprep.mubr.bf16.mxu1 %v767_v39  ;;  %v975_v58 = vld [vmem:[%s1234_s1 + $0x118] sm:$0xff]   ;;  %v977_v60 = vld [vmem:[%s1234_s1 + $0x150] sm:$0xff]   ;;  %v981_v0 = vld [vmem:[%s1234_s1 + $0x148] sm:$0xff]  }
  0x14   :  { %846 = vmatpush3.bf16.msra.mxu0 %v943_v18  ;;  %v976_v59 = vld [vmem:[%s1234_s1 + $0x198] sm:$0xff]   ;;  %v978_v61 = vld [vmem:[%s1234_s1 + $0x1d0] sm:$0xff]   ;;  %v982_v1 = vld [vmem:[%s1234_s1 + $0x1c8] sm:$0xff]  }
  0x15   :  { %868 = vmatpush3.bf16.msra.mxu1 %v944_v19  ;;  %847 = vmatprep.subr.bf16.mxu0 %v945_v20  ;;  %v979_v62 = vld [vmem:[%s1234_s1 + $0x110] sm:$0xff]   ;;  %v983_v2 = vld [vmem:[%s1234_s1 + $0x108] sm:$0xff]   ;;  %v985_v4 = vld [vmem:[%s1234_s1 + $0x140] sm:$0xff]  }
  0x16   :  { %869 = vmatprep.subr.bf16.mxu1 %v946_v21  ;;  %v980_v63 = vld [vmem:[%s1234_s1 + $0x190] sm:$0xff]   ;;  %v984_v3 = vld [vmem:[%s1234_s1 + $0x188] sm:$0xff]   ;;  %v986_v5 = vld [vmem:[%s1234_s1 + $0x1c0] sm:$0xff]  }
  0x17   :  { %v987_v6 = vld [vmem:[%s1234_s1 + $0x100] sm:$0xff]   ;;  %v17_v8 = vld [vmem:[%s1235_s0 + $0x10] sm:$0xff]  ;;  %v18_v12 = vld [vmem:[%s1235_s0 + $0x18] sm:$0xff] }
  0x18   :  { %848 = vmatpush3.bf16.msra.mxu0 %v947_v22  ;;  %v988_v7 = vld [vmem:[%s1234_s1 + $0x180] sm:$0xff]   ;;  %v21_v9 = vld [vmem:[%s1235_s0 + $0x30] sm:$0xff]  ;;  %v22_v13 = vld [vmem:[%s1235_s0 + $0x38] sm:$0xff] }
  0x19   :  { %870 = vmatpush3.bf16.msra.mxu1 %v948_v23  ;;  %849 = vmatprep.subr.bf16.mxu0 %v949_v24  ;;  %v768_v10 = vcombine.low %v17_v8, %v21_v9  ;;  %v769_v11 = vcombine.high %v17_v8, %v21_v9  ;;  %v770_v14 = vcombine.low %v18_v12, %v22_v13  ;;  %v836_v39 = vld [vmem:[%s1236_s2] ss:$0 sm:$0xff] }
  0x1a   :  { %871 = vmatprep.subr.bf16.mxu1 %v950_v25  ;;  %v771_v15 = vcombine.high %v18_v12, %v22_v13 }
  0x1c   :  { %850 = vmatpush3.bf16.msra.mxu0 %v951_v26 }
  0x1d   :  { %872 = vmatpush3.bf16.msra.mxu1 %v952_v27  ;;  %851 = vmatprep.subr.bf16.mxu0 %v953_v28 }
  0x1e   :  { %873 = vmatprep.subr.bf16.mxu1 %v954_v29 }
  0x20   :  { %852 = vmatpush3.bf16.msra.mxu0 %v955_v30 }
  0x21   :  { %874 = vmatpush3.bf16.msra.mxu1 %v956_v31  ;;  %881 = vmatprep.subr.bf16.mxu0 %v957_v40 }
  0x22   :  { %903 = vmatprep.subr.bf16.mxu1 %v958_v41 }
  0x23   :  { %608 = vmatmul.mubr.bf16.vlgmr.msra.gmra.mxu0 %v764_v35 }
  0x24   :  { %649 = vmatmul.mubr.bf16.vlgmr.msra.gmra.mxu1 %v766_v38  ;;  %882 = vmatpush3.bf16.msra.mxu0 %v959_v42 }
  0x25   :  { %904 = vmatpush3.bf16.msra.mxu1 %v960_v43  ;;  %883 = vmatprep.subr.bf16.mxu0 %v961_v44 }
  0x26   :  { %905 = vmatprep.subr.bf16.mxu1 %v962_v45  ;;  %689 = vmatprep.mubr.bf16.mxu0 %v769_v11 }
  0x27   :  { %730 = vmatprep.mubr.bf16.mxu1 %v771_v15 }
  0x28   :  { %884 = vmatpush3.bf16.msra.mxu0 %v963_v46 }
  0x29   :  { %906 = vmatpush3.bf16.msra.mxu1 %v964_v47  ;;  %885 = vmatprep.subr.bf16.mxu0 %v965_v48 }
  0x2a   :  { %907 = vmatprep.subr.bf16.mxu1 %v966_v49 }
  0x2c   :  { %886 = vmatpush3.bf16.msra.mxu0 %v967_v50 }
  0x2d   :  { %908 = vmatpush3.bf16.msra.mxu1 %v968_v51  ;;  %887 = vmatprep.subr.bf16.mxu0 %v969_v52 }
  0x2e   :  { %909 = vmatprep.subr.bf16.mxu1 %v970_v53 }
  0x30   :  { %888 = vmatpush3.bf16.msra.mxu0 %v971_v54 }
  0x31   :  { %910 = vmatpush3.bf16.msra.mxu1 %v972_v55  ;;  %889 = vmatprep.subr.bf16.mxu0 %v973_v56 }
  0x32   :  { %911 = vmatprep.subr.bf16.mxu1 %v974_v57 }
  0x34   :  { %890 = vmatpush3.bf16.msra.mxu0 %v975_v58 }
  0x35   :  { %912 = vmatpush3.bf16.msra.mxu1 %v976_v59  ;;  %891 = vmatprep.subr.bf16.mxu0 %v977_v60 }
  0x36   :  { %913 = vmatprep.subr.bf16.mxu1 %v978_v61 }
  0x38   :  { %892 = vmatpush3.bf16.msra.mxu0 %v979_v62 }
  0x39   :  { %914 = vmatpush3.bf16.msra.mxu1 %v980_v63  ;;  %893 = vmatprep.subr.bf16.mxu0 %v981_v0 }
  0x3a   :  { %915 = vmatprep.subr.bf16.mxu1 %v982_v1 }
  0x3c   :  { %894 = vmatpush3.bf16.msra.mxu0 %v983_v2 }
  0x3d   :  { %916 = vmatpush3.bf16.msra.mxu1 %v984_v3  ;;  %895 = vmatprep.subr.bf16.mxu0 %v985_v4 }
  0x3e   :  { %917 = vmatprep.subr.bf16.mxu1 %v986_v5 }
  0x40   :  { %896 = vmatpush3.bf16.msra.mxu0 %v987_v6 }
  0x41   :  { %918 = vmatpush3.bf16.msra.mxu1 %v988_v7 }
  0x43   :  { %690 = vmatmul.mubr.bf16.vlgmr.msra.gmra.mxu0 %v768_v10 }
  0x44   :  { %731 = vmatmul.mubr.bf16.vlgmr.msra.gmra.mxu1 %v770_v14 }
  0xe3   :  { %v853_v16 = vpop.f32.mrf.mxu0 }
  0xe4   :  { %v875_v17 = vpop.f32.mrf.mxu1 }
  0xe5   :  { %v854_v18 = vpop.f32.mrf.mxu0 }
  0xe6   :  { %v876_v19 = vpop.f32.mrf.mxu1  ;;  %v855_v23 = vadd.f32 %v854_v18, %v853_v16 }
  0xe7   :  { %v856_v20 = vpop.f32.mrf.mxu0  ;;  %v877_v24 = vadd.f32 %v876_v19, %v875_v17 }
  0xe8   :  { %v878_v21 = vpop.f32.mrf.mxu1 }
  0xe9   :  { %v857_v22 = vpop.f32.mrf.mxu0  ;;  %v651_v29 = vadd.f32 %v877_v24, %v855_v23 }
  0xea   :  { %v879_v25 = vpop.f32.mrf.mxu1  ;;  %v858_v30 = vadd.f32 %v857_v22, %v856_v20 }
  0xeb   :  { %v880_v31 = vadd.f32 %v879_v25, %v878_v21 }
  0xed   :  { %v654_v40 = vadd.f32 %v880_v31, %v858_v30 }
 0x103   :  { %v897_v26 = vpop.f32.mrf.mxu0 }
 0x104   :  { %v919_v27 = vpop.f32.mrf.mxu1 }
 0x105   :  { %v898_v28 = vpop.f32.mrf.mxu0 }
 0x106   :  { %v899_v32 = vadd.f32 %v898_v28, %v897_v26  ;;  %v920_v33 = vpop.f32.mrf.mxu1 }
 0x107   :  { %v900_v34 = vpop.f32.mrf.mxu0  ;;  %v921_v36 = vadd.f32 %v920_v33, %v919_v27 }
 0x108   :  { %v692_v35 = vadd.f32 %v899_v32, %v651_v29  ;;  %v922_v37 = vpop.f32.mrf.mxu1 }
 0x109   :  { %v901_v38 = vpop.f32.mrf.mxu0 }
 0x10a   :  { %v733_v41 = vadd.f32 %v921_v36, %v692_v35  ;;  %v902_v42 = vadd.f32 %v901_v38, %v900_v34  ;;  %v923_v43 = vpop.f32.mrf.mxu1 }
 0x10b   :  { %v924_v45 = vadd.f32 %v923_v43, %v922_v37 }
 0x10c   :  { %v695_v44 = vadd.f32 %v902_v42, %v654_v40  ;;  %v746_v46 = vsub.f32 %v733_v41, %v836_v39 }
 0x10e   :  { %v736_v47 = vadd.f32 %v924_v45, %v695_v44  ;;  %v748_v48 = vmul.f32 %v746_v46, %v746_v46 }
 0x110   :  { %v751_v49 = vsel %vm750_vm0, %v748_v48, 0.0  ;;  %v747_v50 = vsub.f32 %v736_v47, %v836_v39 }
 0x111   :  { %752 = vadd.xlane.f32.xlu0 %v751_v49 }
 0x112   :  { %v749_v51 = vmul.f32 %v747_v50, %v747_v50 }
 0x114   :  { %v754_v52 = vsel %vm750_vm0, %v749_v51, 0.0 }
 0x115   :  { %755 = vadd.xlane.f32.xlu0 %v754_v52 }
 0x19a   :  { %v753_v53 = vpop.xlane.xlu0 %752 }
 0x19b   :  { %758 = vst.msk [vmem:[%s1237_s3] sm:$0xff] %vm757_vm1, %v753_v53 }
 0x19e   :  { %v756_v54 = vpop.xlane.xlu0 %755 }
 0x19f   :  { %759 = vst.msk [vmem:[%s1237_s3 + $0x8] sm:$0xff] %vm757_vm1, %v756_v54 }

</bundles_post_ra>
